<compile_context>
chip_gen: v7x
topology: tpu7x:2x2x1
jax: 0.10.0
libtpu: 0.0.40
codegen_flags: <defaults>
</compile_context>

<pallas_src>
import jax
import jax.numpy as jnp
from jax.experimental import pallas as pl
from jax.experimental.pallas import tpu as pltpu


def _mlp_kernel(x_ref, w1_ref, w2_ref, w3_ref, o_ref):
    # x: (TB, D0p) f32 ; w1: (D0p, H1p) bf16 ; w2: (H1p, H2p) bf16 ; w3: (1, H2p) bf16
    # Activations are cast to bf16 for the MXU (single-pass on v6e/v7x);
    # accumulation and the ReLUs stay f32 (v5e VPU has no bf16). This is an
    # inference-grade precision choice (hence the loosened test tolerance).
    x = x_ref[...].astype(jnp.bfloat16)
    h1 = jnp.dot(x, w1_ref[...], preferred_element_type=jnp.float32)
    h1 = jnp.maximum(h1, 0.0)                       # ReLU in f32
    # TODO(synk): nn.Dropout(0.3) is identity in eval mode; training-mode RNG
    # masking not implemented.
    h2 = jnp.dot(h1.astype(jnp.bfloat16), w2_ref[...],
                 preferred_element_type=jnp.float32)
    h2 = jnp.maximum(h2, 0.0)
    # Final 80 -> 1 linear as broadcast multiply + lane reduction: avoids an
    # N=1 MXU pass and any w3 column padding. Zero-padded lanes contribute 0.
    w3 = w3_ref[...].astype(jnp.float32)            # (1, H2p)
    out = jnp.sum(h2 * w3, axis=-1, keepdims=True)  # (TB, 1)
    o_ref[...] = out.astype(o_ref.dtype)


def _rup(v, m):
    return ((v + m - 1) // m) * m


def _resident_weight_spec(block_shape):
    """Grid-invariant weight block: index_map is constant, so request a single
    pipeline buffer (no useless double-buffer). Falls back to a plain spec if
    this JAX version lacks pipeline_mode / pl.Buffered."""
    try:
        return pl.BlockSpec(block_shape, lambda i: (0, 0),
                            pipeline_mode=pl.Buffered(1))
    except (TypeError, AttributeError):
        return pl.BlockSpec(block_shape, lambda i: (0, 0))


def prepare_params(w1, w2, w3):
    """One-time parameter prep: zero-pad to TPU-aligned shapes, cast to bf16.

    w_i are (in_features, out_features) f32, i.e. y = x @ w (== x @ W_pt.T).
    Zero padding is exact for this no-bias MLP (zero rows/cols contribute
    nothing and ReLU(0) = 0). Keep the returned arrays as the live parameters
    so no padding / casting happens on the per-call hot path.
    """
    D0, H1 = w1.shape
    H1b, H2 = w2.shape
    H2b, H3 = w3.shape
    assert H1b == H1 and H2b == H2
    assert H3 == 1, "final-layer mul+reduce path assumes out_channel == 1"
    D0p, H1p, H2p = _rup(D0, 128), _rup(H1, 128), _rup(H2, 128)

    w1p = jnp.zeros((D0p, H1p), jnp.bfloat16).at[:D0, :H1].set(
        w1.astype(jnp.bfloat16))
    w2p = jnp.zeros((H1p, H2p), jnp.bfloat16).at[:H1, :H2].set(
        w2.astype(jnp.bfloat16))
    # Final layer stored as a lane-major row vector (1, H2p).
    w3p = jnp.zeros((1, H2p), jnp.bfloat16).at[0, :H2].set(
        w3[:, 0].astype(jnp.bfloat16))
    return w1p, w2p, w3p


def _batch_tile(B, block_b):
    """Pick the batch tile TB.

    - B <= 8: one tile equal to the full batch (full-extent dim is always a
      legal block shape).
    - B > 8: at least 2 grid steps so the 'parallel' batch axis can shard
      across both v7x TensorCores, capped at block_b, multiple of 8.
    """
    if B <= 8:
        return B
    return min(block_b, _rup(pl.cdiv(B, 2), 8))


def mlp_forward(x, params, *, block_b=512):
    """x: (B, in_channel) f32; params from prepare_params(). Returns (B, 1) f32."""
    w1p, w2p, w3p = params
    B, D0 = x.shape
    D0p, H1p = w1p.shape
    _, H2p = w2p.shape

    if D0 != D0p:                                   # no-op for in_channel=1024
        x = jnp.pad(x, ((0, 0), (0, D0p - D0)))

    # Tile only the batch; weights stay resident across batch tiles.
    TB = _batch_tile(B, block_b)
    grid = (pl.cdiv(B, TB),)
    # Partial last tile: rows are processed independently, so the padded
    # rows Pallas feeds for the out-of-range slice are harmlessly discarded.
    # Do NOT add any batch-wise reduction to this kernel without masking.
    assert TB == B or TB % 8 == 0, (TB, B)

    # VMEM @ TB=512: 2 x 2 MiB x-buffers + ~1.15 MiB single-buffered bf16
    # weights + small f32 intermediates — well under every generation's
    # default scoped VMEM limit (incl. v7x), so no vmem_limit_bytes needed.
    cost = pl.CostEstimate(
        flops=2 * B * (D0p * H1p + H1p * H2p + H2p),
        transcendentals=0,
        bytes_accessed=(x.size * x.dtype.itemsize
                        + sum(int(w.size) * w.dtype.itemsize
                              for w in (w1p, w2p, w3p))
                        + B * 4),
    )

    return pl.pallas_call(
        _mlp_kernel,
        out_shape=jax.ShapeDtypeStruct((B, 1), jnp.float32),
        grid_spec=pltpu.PrefetchScalarGridSpec(
            num_scalar_prefetch=0,
            grid=grid,
            in_specs=[
                pl.BlockSpec((TB, D0p), lambda i: (i, 0)),   # activations: batch-tiled
                _resident_weight_spec((D0p, H1p)),           # weights: resident,
                _resident_weight_spec((H1p, H2p)),           #  single-buffered
                _resident_weight_spec((1, H2p)),
            ],
            out_specs=pl.BlockSpec((TB, 1), lambda i: (i, 0)),
        ),
        compiler_params=pltpu.CompilerParams(
            dimension_semantics=("parallel",)),
        cost_estimate=cost,
    )(x, w1p, w2p, w3p)


def init_params(key, dims=(1024, 500, 80, 1)):
    """Synthetic PyTorch-Linear-like init, stored as (in_features, out_features)."""
    ws = []
    for i in range(len(dims) - 1):
        key, sub = jax.random.split(key)
        bound = 1.0 / jnp.sqrt(dims[i])
        ws.append(jax.random.uniform(
            sub, (dims[i], dims[i + 1]), minval=-bound, maxval=bound,
            dtype=jnp.float32))
    return ws


if __name__ == "__main__":
    key = jax.random.PRNGKey(0)
    k_x, k_w = jax.random.split(key)

    B, in_channel, out_channel = 8, 1024, 1
    x = jax.random.normal(k_x, (B, in_channel), dtype=jnp.float32)
    w1, w2, w3 = init_params(k_w, dims=(in_channel, 500, 80, out_channel))

    params = prepare_params(w1, w2, w3)     # one-time pad + bf16 cast
    y = mlp_forward(x, params)
    jax.block_until_ready(y)

    # Pure-JAX f32 reference (same eval-mode semantics). bf16 weight/activation
    # rounding means a loosened tolerance vs the f32 reference.
    h = jnp.maximum(x @ w1, 0.0)
    h = jnp.maximum(h @ w2, 0.0)
    y_ref = h @ w3
    assert y.shape == (B, out_channel), y.shape
    max_err = float(jnp.max(jnp.abs(y - y_ref)))
    assert jnp.allclose(y, y_ref, atol=3e-2, rtol=3e-2), max_err

    # Also exercise the multi-tile / partial-last-tile path (grid >= 2,
    # B not a multiple of TB) to make sure the batch tiling logic is sound.
    B2 = 20
    x2 = jax.random.normal(jax.random.PRNGKey(1), (B2, in_channel), jnp.float32)
    y2 = mlp_forward(x2, params)
    jax.block_until_ready(y2)
    h2 = jnp.maximum(x2 @ w1, 0.0)
    h2 = jnp.maximum(h2 @ w2, 0.0)
    y2_ref = h2 @ w3
    assert y2.shape == (B2, out_channel), y2.shape
    assert jnp.allclose(y2, y2_ref, atol=3e-2, rtol=3e-2), float(
        jnp.max(jnp.abs(y2 - y2_ref)))

    print("KERNEL_OK")
</pallas_src>

<mosaic_0001>
module attributes {stable_mosaic.version = 11 : i64} {
  func.func @_mlp_kernel(%arg0: i32, %arg1: memref<8x1024xf32, #tpu.memory_space<vmem>>, %arg2: memref<1024x512xbf16, #tpu.memory_space<vmem>>, %arg3: memref<512x128xbf16, #tpu.memory_space<vmem>>, %arg4: memref<1x128xbf16, #tpu.memory_space<vmem>>, %arg5: memref<8x1xf32, #tpu.memory_space<vmem>>) attributes {dimension_semantics = [#tpu.dimension_semantics<parallel>], iteration_bounds = array<i64: 1>, scalar_prefetch = 0 : i64, scratch_operands = 0 : i64, tpu.core_type = #tpu.core_type<tc>, window_params = [{transform_indices = @transform_0, window_bounds = array<i64: 8, 1024>}, {pipeline_mode = #tpu.pipeline_mode<synchronous>, transform_indices = @transform_1, window_bounds = array<i64: 1024, 512>}, {pipeline_mode = #tpu.pipeline_mode<synchronous>, transform_indices = @transform_2, window_bounds = array<i64: 512, 128>}, {pipeline_mode = #tpu.pipeline_mode<synchronous>, transform_indices = @transform_3, window_bounds = array<i64: 1, 128>}, {transform_indices = @transform_4, window_bounds = array<i64: 8, 1>}]} {
    %c0 = arith.constant 0 : index
    %c0_0 = arith.constant 0 : index
    %0 = vector.load %arg1[%c0, %c0_0] : memref<8x1024xf32, #tpu.memory_space<vmem>>, vector<8x1024xf32>
    %1 = arith.truncf %0 : vector<8x1024xf32> to vector<8x1024xbf16>
    %c0_1 = arith.constant 0 : index
    %c0_2 = arith.constant 0 : index
    %2 = vector.load %arg2[%c0_1, %c0_2] : memref<1024x512xbf16, #tpu.memory_space<vmem>>, vector<1024x512xbf16>
    %cst = arith.constant dense<0.000000e+00> : vector<8x512xf32>
    %3 = tpu.matmul %1, %2, %cst {dimension_numbers = #tpu.dot_dimension_numbers<[1], [0], [0], [1], [0, 0, 1, 1], [], []>} : vector<8x1024xbf16>, vector<1024x512xbf16>, vector<8x512xf32> -> vector<8x512xf32>
    %cst_3 = arith.constant 0.000000e+00 : f32
    %4 = vector.broadcast %cst_3 : f32 to vector<8x512xf32>
    %5 = arith.maximumf %3, %4 : vector<8x512xf32>
    %6 = arith.truncf %5 : vector<8x512xf32> to vector<8x512xbf16>
    %c0_4 = arith.constant 0 : index
    %c0_5 = arith.constant 0 : index
    %7 = vector.load %arg3[%c0_4, %c0_5] : memref<512x128xbf16, #tpu.memory_space<vmem>>, vector<512x128xbf16>
    %cst_6 = arith.constant dense<0.000000e+00> : vector<8x128xf32>
    %8 = tpu.matmul %6, %7, %cst_6 {dimension_numbers = #tpu.dot_dimension_numbers<[1], [0], [0], [1], [0, 0, 1, 1], [], []>} : vector<8x512xbf16>, vector<512x128xbf16>, vector<8x128xf32> -> vector<8x128xf32>
    %cst_7 = arith.constant 0.000000e+00 : f32
    %9 = vector.broadcast %cst_7 : f32 to vector<8x128xf32>
    %10 = arith.maximumf %8, %9 : vector<8x128xf32>
    %c0_8 = arith.constant 0 : index
    %c0_9 = arith.constant 0 : index
    %11 = vector.load %arg4[%c0_8, %c0_9] : memref<1x128xbf16, #tpu.memory_space<vmem>>, vector<1x128xbf16>
    %12 = arith.extf %11 : vector<1x128xbf16> to vector<1x128xf32>
    %13 = vector.broadcast %12 : vector<1x128xf32> to vector<8x128xf32>
    %14 = arith.mulf %10, %13 : vector<8x128xf32>
    %cst_10 = arith.constant dense<0.000000e+00> : vector<8xf32>
    %15 = vector.multi_reduction <add>, %14, %cst_10 [1] : vector<8x128xf32> to vector<8xf32>
    %16 = vector.shape_cast %15 : vector<8xf32> to vector<8x1xf32>
    %c0_11 = arith.constant 0 : index
    %c0_12 = arith.constant 0 : index
    %17 = vector.load %arg5[%c0_11, %c0_12] : memref<8x1xf32, #tpu.memory_space<vmem>>, vector<8x1xf32>
    tpu.vector_store %arg5[%c0_11, %c0_12], %16 {strides = array<i32>} : memref<8x1xf32, #tpu.memory_space<vmem>>, vector<8x1xf32>,
    return
  }
  func.func @transform_0(%arg0: i32) -> (i32, i32) {
    %c0_i32 = arith.constant 0 : i32
    %c0_i32_0 = arith.constant 0 : i32
    return %arg0, %c0_i32 : i32, i32
  }
  func.func @transform_1(%arg0: i32) -> (i32, i32) {
    %c0_i32 = arith.constant 0 : i32
    %c0_i32_0 = arith.constant 0 : i32
    %c0_i32_1 = arith.constant 0 : i32
    return %c0_i32, %c0_i32_0 : i32, i32
  }
  func.func @transform_2(%arg0: i32) -> (i32, i32) {
    %c0_i32 = arith.constant 0 : i32
    %c0_i32_0 = arith.constant 0 : i32
    %c0_i32_1 = arith.constant 0 : i32
    return %c0_i32, %c0_i32_0 : i32, i32
  }
  func.func @transform_3(%arg0: i32) -> (i32, i32) {
    %c0_i32 = arith.constant 0 : i32
    %c0_i32_0 = arith.constant 0 : i32
    %c0_i32_1 = arith.constant 0 : i32
    return %c0_i32, %c0_i32_0 : i32, i32
  }
  func.func @transform_4(%arg0: i32) -> (i32, i32) {
    %c0_i32 = arith.constant 0 : i32
    %c0_i32_0 = arith.constant 0 : i32
    return %arg0, %c0_i32 : i32, i32
  }
}

</mosaic_0001>

<bundles_post_ra>
// kernel: tpu_custom_call.1
= control target key start
LH: loop header
LB: loop body
LE: loop exit
PB: predicated region body
PF: predicated region fallthrough
CT: control target
= control target key end

     0   :  { %9 = vsyncpa [#allocation3], 0  ;;  %s3222_s0 = inlined_call_operand.hbm [shape: f32[8,1024], index: 0, kind: input, shape index: {}]   ;;  %s3223_s1 = inlined_call_operand.hbm [shape: bf16[1024,512], index: 1, kind: input, shape index: {}]   ;;  %s3224_s2 = inlined_call_operand.hbm [shape: bf16[512,128], index: 2, kind: input, shape index: {}]   ;;  %s3225_s3 = inlined_call_operand.vmem [shape: bf16[1,128], index: 3, kind: input, shape index: {}]   ;;  %s3226_s4 = inlined_call_operand.vmem [shape: f32[8,1], index: 4, kind: output, shape index: {}]  }
   0x1   :  { %10 = vsyncpa [#allocation5], 0  ;;  %s3148_s15 = smov [#allocation4]   ;;  %s3078_s19 = scalar_lea.hbm %s3223_s1, 32768 }
   0x2   :  { %s26_s16 = sshll.u32 %s3148_s15, 4  ;;  %p3079_p0 = scmp.ne.s32.totalorder %s3223_s1, %s3078_s19  ;;  %s27_s16 = int_to_ptr.vmem [resolvable:$true] %s26_s16 }
   0x3   :  { %p3082_p1 = scmp.lt.u32.totalorder %s3078_s19, %s3223_s1 }
   0x5   :  { %p3084_p2 = pnand %p3082_p1, %p3079_p0 }
   0x7   :  { %3087 = shalt.err (!%p3084_p2)
}
   0x8   :  { %s3088_s24 = scalar_lea.vmem %s27_s16, 32768  ;;  %p3093_p4 = scmp.lt.s32.totalorder %s27_s16, %s27_s16 }
   0x9   :  { %p3089_p3 = scmp.ne.s32.totalorder %s27_s16, %s3088_s24  ;;  %p3094_p5 = scmp.lt.s32.totalorder %s3088_s24, %s3088_s24 }
   0xb   :  { %p3095_p6 = por %p3094_p5, %p3093_p4 }
   0xd   :  { %p3096_p7 = pnand %p3095_p6, %p3089_p3 }
   0xf   :  { %3099 = shalt.err (!%p3096_p7)
}
  0x10   :  { %s3149_s25 = smov 256   ;;  %s3150_s26 = smov 16  }
  0x11   :  { %32 = dma.hbm_to_vmem [thread:$0]  %s3223_s1, 32768, %s27_s16, [#allocation5], %s3149_s25, %s3149_s25, %s3150_s26  }
  0x12   :  { %s3151_s29 = smov [#allocation2]   ;;  %s3152_s5 = smov [#allocation6]  }
  0x13   :  { %s17_s30 = sshll.u32 %s3151_s29, 4  ;;  %s38_s6 = sshll.u32 %s3152_s5, 4  ;;  %s18_s30 = int_to_ptr.vmem [resolvable:$true] %s17_s30  ;;  %s39_s6 = int_to_ptr.vmem [resolvable:$true] %s38_s6 }
  0x14   :  { %s3100_s9 = scalar_lea.hbm %s3222_s0, 1024 }
  0x15   :  { %p3101_p8 = scmp.ne.s32.totalorder %s3222_s0, %s3100_s9  ;;  %p3104_p9 = scmp.lt.u32.totalorder %s3100_s9, %s3222_s0 }
  0x17   :  { %p3106_p10 = pnand %p3104_p9, %p3101_p8 }
  0x19   :  { %3109 = shalt.err (!%p3106_p10)
}
  0x1a   :  { %s3110_s1 = scalar_lea.vmem %s18_s30, 1024  ;;  %p3115_p12 = scmp.lt.s32.totalorder %s18_s30, %s18_s30 }
  0x1b   :  { %p3111_p11 = scmp.ne.s32.totalorder %s18_s30, %s3110_s1  ;;  %p3116_p13 = scmp.lt.s32.totalorder %s3110_s1, %s3110_s1 }
  0x1d   :  { %p3117_p0 = por %p3116_p13, %p3115_p12 }
  0x1f   :  { %p3118_p1 = pnand %p3117_p0, %p3111_p11 }
  0x21   :  { %3121 = shalt.err (!%p3118_p1)
}
  0x22   :  { %20 = dma.hbm_to_vmem [thread:$0]  %s3222_s0, 1024, %s18_s30, [#allocation3]  }
  0x23   :  { %s3122_s18 = scalar_lea.hbm %s3224_s2, 4096 }
  0x24   :  { %p3123_p2 = scmp.ne.s32.totalorder %s3224_s2, %s3122_s18  ;;  %p3126_p3 = scmp.lt.u32.totalorder %s3122_s18, %s3224_s2 }
  0x26   :  { %p3128_p4 = pnand %p3126_p3, %p3123_p2 }
  0x28   :  { %3131 = shalt.err (!%p3128_p4)
}
  0x29   :  { %s3132_s23 = scalar_lea.vmem %s39_s6, 4096  ;;  %p3137_p6 = scmp.lt.s32.totalorder %s39_s6, %s39_s6 }
  0x2a   :  { %p3133_p5 = scmp.ne.s32.totalorder %s39_s6, %s3132_s23  ;;  %p3138_p7 = scmp.lt.s32.totalorder %s3132_s23, %s3132_s23 }
  0x2c   :  { %p3139_p8 = por %p3138_p7, %p3137_p6 }
  0x2e   :  { %p3140_p9 = pnand %p3139_p8, %p3133_p5 }
  0x30   :  { %3143 = shalt.err (!%p3140_p9)
}
  0x31   :  { %s3153_s0 = smov 64   ;;  %s3154_s24 = smov 4  }
  0x32   :  { %44 = dma.hbm_to_vmem [thread:$0]  %s3224_s2, 4096, %s39_s6, [#allocation5], %s3153_s0, %s3153_s0, %s3154_s24  }
  0x33   :  { %3144 = dma.done.wait [#allocation3], 1024  }
  0x34   :  { %3145 = vsyncadd [#allocation3], 4294966272 }
  0x35   :  { %3146 = dma.done.wait [#allocation5], 36864  }
  0x36   :  { %3147 = vsyncadd [#allocation5], 4294930432  ;;  %v2662_v0 = vld [vmem:[#allocation4 + $0x4] ss:$16 sps:$4 sm:$0xff]   ;;  %v2664_v1 = vld [vmem:[#allocation4 + $0xc] ss:$16 sps:$4 sm:$0xff]  }
  0x37   :  { %1609 = vmatprep.subr.bf16.mxu0 %v2662_v0  ;;  %v2666_v2 = vld [vmem:[#allocation4] ss:$16 sps:$4 sm:$0xff]   ;;  %v2667_v3 = vld [vmem:[#allocation4 + $0x8] ss:$16 sps:$4 sm:$0xff]   ;;  %1773 = vmatprep.subr.bf16.mxu1 %v2664_v1  ;;  %v2668_v4 = vld [vmem:[#allocation4 + $0x24] ss:$16 sps:$4 sm:$0xff]  }
  0x38   :  { %1610 = vmatpush1.bf16.msra.mxu0 %v2666_v2  ;;  %1774 = vmatpush1.bf16.msra.mxu1 %v2667_v3  ;;  %v2670_v5 = vld [vmem:[#allocation4 + $0x2c] ss:$16 sps:$4 sm:$0xff]   ;;  %v2672_v6 = vld [vmem:[#allocation4 + $0x20] ss:$16 sps:$4 sm:$0xff]   ;;  %v2673_v7 = vld [vmem:[#allocation4 + $0x28] ss:$16 sps:$4 sm:$0xff]  }
  0x39   :  { %1611 = vmatprep.subr.bf16.mxu0 %v2668_v4  ;;  %1775 = vmatprep.subr.bf16.mxu1 %v2670_v5  ;;  %v2674_v8 = vld [vmem:[#allocation4 + $0x44] ss:$16 sps:$4 sm:$0xff]   ;;  %v2676_v9 = vld [vmem:[#allocation4 + $0x4c] ss:$16 sps:$4 sm:$0xff]   ;;  %v2678_v10 = vld [vmem:[#allocation4 + $0x40] ss:$16 sps:$4 sm:$0xff]  }
  0x3a   :  { %v2679_v11 = vld [vmem:[#allocation4 + $0x48] ss:$16 sps:$4 sm:$0xff]   ;;  %v2680_v12 = vld [vmem:[#allocation4 + $0x64] ss:$16 sps:$4 sm:$0xff]   ;;  %v2682_v13 = vld [vmem:[#allocation4 + $0x6c] ss:$16 sps:$4 sm:$0xff]  }
  0x3b   :  { %v2684_v14 = vld [vmem:[#allocation4 + $0x60] ss:$16 sps:$4 sm:$0xff]   ;;  %v2685_v15 = vld [vmem:[#allocation4 + $0x68] ss:$16 sps:$4 sm:$0xff]   ;;  %v2686_v16 = vld [vmem:[#allocation4 + $0x84] ss:$16 sps:$4 sm:$0xff]  }
  0x3c   :  { %1612 = vmatpush1.bf16.msra.mxu0 %v2672_v6  ;;  %1776 = vmatpush1.bf16.msra.mxu1 %v2673_v7  ;;  %v2688_v17 = vld [vmem:[#allocation4 + $0x8c] ss:$16 sps:$4 sm:$0xff]   ;;  %v2690_v18 = vld [vmem:[#allocation4 + $0x80] ss:$16 sps:$4 sm:$0xff]   ;;  %v2691_v19 = vld [vmem:[#allocation4 + $0x88] ss:$16 sps:$4 sm:$0xff]  }
  0x3d   :  { %1613 = vmatprep.subr.bf16.mxu0 %v2674_v8  ;;  %1777 = vmatprep.subr.bf16.mxu1 %v2676_v9  ;;  %v2692_v20 = vld [vmem:[#allocation4 + $0xa4] ss:$16 sps:$4 sm:$0xff]   ;;  %v2694_v21 = vld [vmem:[#allocation4 + $0xac] ss:$16 sps:$4 sm:$0xff]   ;;  %v2696_v22 = vld [vmem:[#allocation4 + $0xa0] ss:$16 sps:$4 sm:$0xff]  }
  0x3e   :  { %v2697_v23 = vld [vmem:[#allocation4 + $0xa8] ss:$16 sps:$4 sm:$0xff]   ;;  %v2698_v24 = vld [vmem:[#allocation4 + $0xc4] ss:$16 sps:$4 sm:$0xff]   ;;  %v2700_v25 = vld [vmem:[#allocation4 + $0xcc] ss:$16 sps:$4 sm:$0xff]  }
  0x3f   :  { %v2702_v26 = vld [vmem:[#allocation4 + $0xc0] ss:$16 sps:$4 sm:$0xff]   ;;  %v2703_v27 = vld [vmem:[#allocation4 + $0xc8] ss:$16 sps:$4 sm:$0xff]   ;;  %v2704_v28 = vld [vmem:[#allocation4 + $0xe4] ss:$16 sps:$4 sm:$0xff]  }
  0x40   :  { %1614 = vmatpush1.bf16.msra.mxu0 %v2678_v10  ;;  %1778 = vmatpush1.bf16.msra.mxu1 %v2679_v11  ;;  %v2706_v29 = vld [vmem:[#allocation4 + $0xec] ss:$16 sps:$4 sm:$0xff]   ;;  %v2708_v30 = vld [vmem:[#allocation4 + $0xe0] ss:$16 sps:$4 sm:$0xff]   ;;  %v2709_v31 = vld [vmem:[#allocation4 + $0xe8] ss:$16 sps:$4 sm:$0xff]  }
  0x41   :  { %1615 = vmatprep.subr.bf16.mxu0 %v2680_v12  ;;  %1779 = vmatprep.subr.bf16.mxu1 %v2682_v13  ;;  %v2710_v32 = vld [vmem:[#allocation4 + $0x104] ss:$16 sps:$4 sm:$0xff]   ;;  %v2712_v33 = vld [vmem:[#allocation4 + $0x10c] ss:$16 sps:$4 sm:$0xff]   ;;  %v2714_v34 = vld [vmem:[#allocation4 + $0x100] ss:$16 sps:$4 sm:$0xff]  }
  0x42   :  { %v2715_v35 = vld [vmem:[#allocation4 + $0x108] ss:$16 sps:$4 sm:$0xff]   ;;  %v2716_v36 = vld [vmem:[#allocation4 + $0x124] ss:$16 sps:$4 sm:$0xff]   ;;  %v2718_v37 = vld [vmem:[#allocation4 + $0x12c] ss:$16 sps:$4 sm:$0xff]  }
  0x43   :  { %v2720_v38 = vld [vmem:[#allocation4 + $0x120] ss:$16 sps:$4 sm:$0xff]   ;;  %v2721_v39 = vld [vmem:[#allocation4 + $0x128] ss:$16 sps:$4 sm:$0xff]   ;;  %v2722_v40 = vld [vmem:[#allocation4 + $0x144] ss:$16 sps:$4 sm:$0xff]  }
  0x44   :  { %1616 = vmatpush1.bf16.msra.mxu0 %v2684_v14  ;;  %1780 = vmatpush1.bf16.msra.mxu1 %v2685_v15  ;;  %v2724_v41 = vld [vmem:[#allocation4 + $0x14c] ss:$16 sps:$4 sm:$0xff]   ;;  %v2726_v42 = vld [vmem:[#allocation4 + $0x140] ss:$16 sps:$4 sm:$0xff]   ;;  %v2727_v43 = vld [vmem:[#allocation4 + $0x148] ss:$16 sps:$4 sm:$0xff]  }
  0x45   :  { %1617 = vmatprep.subr.bf16.mxu0 %v2686_v16  ;;  %1781 = vmatprep.subr.bf16.mxu1 %v2688_v17  ;;  %v2728_v44 = vld [vmem:[#allocation4 + $0x164] ss:$16 sps:$4 sm:$0xff]   ;;  %v2730_v45 = vld [vmem:[#allocation4 + $0x16c] ss:$16 sps:$4 sm:$0xff]   ;;  %v2732_v47 = vld [vmem:[#allocation4 + $0x160] ss:$16 sps:$4 sm:$0xff]  }
  0x46   :  { %v58_v46 = vld [vmem:[#allocation2 + $0x8] sm:$0xff]  ;;  %v2734_v50 = vld [vmem:[#allocation4 + $0x184] ss:$16 sps:$4 sm:$0xff]   ;;  %v2738_v52 = vld [vmem:[#allocation4 + $0x180] ss:$16 sps:$4 sm:$0xff]   ;;  %vm2291_vm0 = vcmask 7168  }
  0x47   :  { %v66_v48 = vpack.c.bf16 %v58_v46, %v58_v46  ;;  %v2733_v49 = vld [vmem:[#allocation4 + $0x168] ss:$16 sps:$4 sm:$0xff]   ;;  %v2736_v51 = vld [vmem:[#allocation4 + $0x18c] ss:$16 sps:$4 sm:$0xff]   ;;  %v2740_v54 = vld [vmem:[#allocation4 + $0x1a4] ss:$16 sps:$4 sm:$0xff]  }
  0x48   :  { %1618 = vmatpush1.bf16.msra.mxu0 %v2690_v18  ;;  %1782 = vmatpush1.bf16.msra.mxu1 %v2691_v19  ;;  %v2739_v53 = vld [vmem:[#allocation4 + $0x188] ss:$16 sps:$4 sm:$0xff]   ;;  %v2742_v55 = vld [vmem:[#allocation4 + $0x1ac] ss:$16 sps:$4 sm:$0xff]   ;;  %v2744_v56 = vld [vmem:[#allocation4 + $0x1a0] ss:$16 sps:$4 sm:$0xff]  }
  0x49   :  { %1619 = vmatprep.subr.bf16.mxu0 %v2692_v20  ;;  %1783 = vmatprep.subr.bf16.mxu1 %v2694_v21  ;;  %v2745_v57 = vld [vmem:[#allocation4 + $0x1a8] ss:$16 sps:$4 sm:$0xff]   ;;  %v2746_v58 = vld [vmem:[#allocation4 + $0x1c4] ss:$16 sps:$4 sm:$0xff]   ;;  %v2748_v59 = vld [vmem:[#allocation4 + $0x1cc] ss:$16 sps:$4 sm:$0xff]  }
  0x4a   :  { %1641 = vmatprep.mubr.bf16.mxu0 %v66_v48  ;;  %1805 = vmatprep.mubr.bf16.mxu1 %v66_v48  ;;  %v2750_v60 = vld [vmem:[#allocation4 + $0x1c0] ss:$16 sps:$4 sm:$0xff]   ;;  %v2751_v61 = vld [vmem:[#allocation4 + $0x1c8] ss:$16 sps:$4 sm:$0xff]   ;;  %v2752_v62 = vld [vmem:[#allocation4 + $0x1e4] ss:$16 sps:$4 sm:$0xff]  }
  0x4b   :  { %v2754_v63 = vld [vmem:[#allocation4 + $0x1ec] ss:$16 sps:$4 sm:$0xff]   ;;  %v2756_v0 = vld [vmem:[#allocation4 + $0x1e0] ss:$16 sps:$4 sm:$0xff]   ;;  %v2757_v1 = vld [vmem:[#allocation4 + $0x1e8] ss:$16 sps:$4 sm:$0xff]  }
  0x4c   :  { %1620 = vmatpush1.bf16.msra.mxu0 %v2696_v22  ;;  %1784 = vmatpush1.bf16.msra.mxu1 %v2697_v23  ;;  %v57_v2 = vld [vmem:[#allocation2] sm:$0xff]  ;;  %v2763_v4 = vld [vmem:[#allocation4 + $0x20c] ss:$16 sps:$4 sm:$0xff]   ;;  %v2761_v7 = vld [vmem:[#allocation4 + $0x208] ss:$16 sps:$4 sm:$0xff]  }
  0x4d   :  { %1621 = vmatprep.subr.bf16.mxu0 %v2698_v24  ;;  %1785 = vmatprep.subr.bf16.mxu1 %v2700_v25  ;;  %v2760_v3 = vld [vmem:[#allocation4 + $0x204] ss:$16 sps:$4 sm:$0xff]   ;;  %v65_v5 = vpack.c.bf16 %v57_v2, %v57_v2  ;;  %v2758_v6 = vld [vmem:[#allocation4 + $0x200] ss:$16 sps:$4 sm:$0xff]   ;;  %v2769_v9 = vld [vmem:[#allocation4 + $0x22c] ss:$16 sps:$4 sm:$0xff]  }
  0x4e   :  { %v2766_v8 = vld [vmem:[#allocation4 + $0x224] ss:$16 sps:$4 sm:$0xff]   ;;  %v2764_v10 = vld [vmem:[#allocation4 + $0x220] ss:$16 sps:$4 sm:$0xff]   ;;  %v2767_v11 = vld [vmem:[#allocation4 + $0x228] ss:$16 sps:$4 sm:$0xff]  }
  0x4f   :  { %v2772_v12 = vld [vmem:[#allocation4 + $0x244] ss:$16 sps:$4 sm:$0xff]   ;;  %v2775_v13 = vld [vmem:[#allocation4 + $0x24c] ss:$16 sps:$4 sm:$0xff]   ;;  %v2770_v14 = vld [vmem:[#allocation4 + $0x240] ss:$16 sps:$4 sm:$0xff]  }
  0x50   :  { %1622 = vmatpush1.bf16.msra.mxu0 %v2702_v26  ;;  %1786 = vmatpush1.bf16.msra.mxu1 %v2703_v27  ;;  %v2773_v15 = vld [vmem:[#allocation4 + $0x248] ss:$16 sps:$4 sm:$0xff]   ;;  %v2778_v16 = vld [vmem:[#allocation4 + $0x264] ss:$16 sps:$4 sm:$0xff]   ;;  %v2781_v17 = vld [vmem:[#allocation4 + $0x26c] ss:$16 sps:$4 sm:$0xff]  }
  0x51   :  { %1623 = vmatprep.subr.bf16.mxu0 %v2704_v28  ;;  %1787 = vmatprep.subr.bf16.mxu1 %v2706_v29  ;;  %v2776_v18 = vld [vmem:[#allocation4 + $0x260] ss:$16 sps:$4 sm:$0xff]   ;;  %v2779_v19 = vld [vmem:[#allocation4 + $0x268] ss:$16 sps:$4 sm:$0xff]   ;;  %v2784_v20 = vld [vmem:[#allocation4 + $0x284] ss:$16 sps:$4 sm:$0xff]  }
  0x52   :  { %v2787_v21 = vld [vmem:[#allocation4 + $0x28c] ss:$16 sps:$4 sm:$0xff]   ;;  %v2782_v22 = vld [vmem:[#allocation4 + $0x280] ss:$16 sps:$4 sm:$0xff]   ;;  %v2785_v23 = vld [vmem:[#allocation4 + $0x288] ss:$16 sps:$4 sm:$0xff]  }
  0x53   :  { %v2790_v24 = vld [vmem:[#allocation4 + $0x2a4] ss:$16 sps:$4 sm:$0xff]   ;;  %v2793_v25 = vld [vmem:[#allocation4 + $0x2ac] ss:$16 sps:$4 sm:$0xff]   ;;  %v2788_v26 = vld [vmem:[#allocation4 + $0x2a0] ss:$16 sps:$4 sm:$0xff]  }
  0x54   :  { %1624 = vmatpush1.bf16.msra.mxu0 %v2708_v30  ;;  %1788 = vmatpush1.bf16.msra.mxu1 %v2709_v31  ;;  %v2791_v27 = vld [vmem:[#allocation4 + $0x2a8] ss:$16 sps:$4 sm:$0xff]   ;;  %v2796_v28 = vld [vmem:[#allocation4 + $0x2c4] ss:$16 sps:$4 sm:$0xff]   ;;  %v2799_v29 = vld [vmem:[#allocation4 + $0x2cc] ss:$16 sps:$4 sm:$0xff]  }
  0x55   :  { %1625 = vmatprep.subr.bf16.mxu0 %v2710_v32  ;;  %1789 = vmatprep.subr.bf16.mxu1 %v2712_v33  ;;  %v60_v30 = vld [vmem:[#allocation2 + $0x18] sm:$0xff]  ;;  %v2794_v31 = vld [vmem:[#allocation4 + $0x2c0] ss:$16 sps:$4 sm:$0xff]   ;;  %v2820_v46 = vld [vmem:[#allocation4 + $0x344] ss:$16 sps:$4 sm:$0xff]  }
  0x56   :  { %v68_v32 = vpack.c.bf16 %v60_v30, %v60_v30  ;;  %v2797_v33 = vld [vmem:[#allocation4 + $0x2c8] ss:$16 sps:$4 sm:$0xff]   ;;  %v2818_v48 = vld [vmem:[#allocation4 + $0x340] ss:$16 sps:$4 sm:$0xff]   ;;  %v2850_v2 = vld [vmem:[#allocation4 + $0x3e4] ss:$16 sps:$4 sm:$0xff]  }
  0x57   :  { %v2886_v30 = vld [vmem:[#allocation4 + $0x4a4] ss:$16 sps:$4 sm:$0xff]  }
  0x58   :  { %1626 = vmatpush1.bf16.msra.mxu0 %v2714_v34  ;;  %1790 = vmatpush1.bf16.msra.mxu1 %v2715_v35  ;;  %v2802_v34 = vld [vmem:[#allocation4 + $0x2e4] ss:$16 sps:$4 sm:$0xff]   ;;  %v2805_v35 = vld [vmem:[#allocation4 + $0x2ec] ss:$16 sps:$4 sm:$0xff]  }
  0x59   :  { %1627 = vmatprep.subr.bf16.mxu0 %v2716_v36  ;;  %1791 = vmatprep.subr.bf16.mxu1 %v2718_v37  ;;  %v2800_v36 = vld [vmem:[#allocation4 + $0x2e0] ss:$16 sps:$4 sm:$0xff]   ;;  %v2803_v37 = vld [vmem:[#allocation4 + $0x2e8] ss:$16 sps:$4 sm:$0xff]  }
  0x5c   :  { %1628 = vmatpush1.bf16.msra.mxu0 %v2720_v38  ;;  %1792 = vmatpush1.bf16.msra.mxu1 %v2721_v39  ;;  %v2808_v38 = vld [vmem:[#allocation4 + $0x304] ss:$16 sps:$4 sm:$0xff]   ;;  %v2811_v39 = vld [vmem:[#allocation4 + $0x30c] ss:$16 sps:$4 sm:$0xff]  }
  0x5d   :  { %1629 = vmatprep.subr.bf16.mxu0 %v2722_v40  ;;  %1793 = vmatprep.subr.bf16.mxu1 %v2724_v41  ;;  %v2806_v40 = vld [vmem:[#allocation4 + $0x300] ss:$16 sps:$4 sm:$0xff]   ;;  %v2809_v41 = vld [vmem:[#allocation4 + $0x308] ss:$16 sps:$4 sm:$0xff]  }
  0x60   :  { %1630 = vmatpush1.bf16.msra.mxu0 %v2726_v42  ;;  %1794 = vmatpush1.bf16.msra.mxu1 %v2727_v43  ;;  %v2814_v42 = vld [vmem:[#allocation4 + $0x324] ss:$16 sps:$4 sm:$0xff]   ;;  %v2817_v43 = vld [vmem:[#allocation4 + $0x32c] ss:$16 sps:$4 sm:$0xff]  }
  0x61   :  { %1631 = vmatprep.subr.bf16.mxu0 %v2728_v44  ;;  %1795 = vmatprep.subr.bf16.mxu1 %v2730_v45  ;;  %v2812_v44 = vld [vmem:[#allocation4 + $0x320] ss:$16 sps:$4 sm:$0xff]   ;;  %v2815_v45 = vld [vmem:[#allocation4 + $0x328] ss:$16 sps:$4 sm:$0xff]  }
  0x64   :  { %1632 = vmatpush1.bf16.msra.mxu0 %v2732_v47  ;;  %1796 = vmatpush1.bf16.msra.mxu1 %v2733_v49  ;;  %v2823_v47 = vld [vmem:[#allocation4 + $0x34c] ss:$16 sps:$4 sm:$0xff]   ;;  %v2821_v49 = vld [vmem:[#allocation4 + $0x348] ss:$16 sps:$4 sm:$0xff]  }
  0x65   :  { %1633 = vmatprep.subr.bf16.mxu0 %v2734_v50  ;;  %1797 = vmatprep.subr.bf16.mxu1 %v2736_v51  ;;  %v2826_v50 = vld [vmem:[#allocation4 + $0x364] ss:$16 sps:$4 sm:$0xff]   ;;  %v2829_v51 = vld [vmem:[#allocation4 + $0x36c] ss:$16 sps:$4 sm:$0xff]  }
  0x68   :  { %1634 = vmatpush1.bf16.msra.mxu0 %v2738_v52  ;;  %1798 = vmatpush1.bf16.msra.mxu1 %v2739_v53  ;;  %v2824_v52 = vld [vmem:[#allocation4 + $0x360] ss:$16 sps:$4 sm:$0xff]   ;;  %v2827_v53 = vld [vmem:[#allocation4 + $0x368] ss:$16 sps:$4 sm:$0xff]  }
  0x69   :  { %1635 = vmatprep.subr.bf16.mxu0 %v2740_v54  ;;  %1799 = vmatprep.subr.bf16.mxu1 %v2742_v55  ;;  %v2832_v54 = vld [vmem:[#allocation4 + $0x384] ss:$16 sps:$4 sm:$0xff]   ;;  %v2835_v55 = vld [vmem:[#allocation4 + $0x38c] ss:$16 sps:$4 sm:$0xff]  }
  0x6c   :  { %1636 = vmatpush1.bf16.msra.mxu0 %v2744_v56  ;;  %1800 = vmatpush1.bf16.msra.mxu1 %v2745_v57  ;;  %v2830_v56 = vld [vmem:[#allocation4 + $0x380] ss:$16 sps:$4 sm:$0xff]   ;;  %v2833_v57 = vld [vmem:[#allocation4 + $0x388] ss:$16 sps:$4 sm:$0xff]  }
  0x6d   :  { %1637 = vmatprep.subr.bf16.mxu0 %v2746_v58  ;;  %1801 = vmatprep.subr.bf16.mxu1 %v2748_v59  ;;  %v2838_v58 = vld [vmem:[#allocation4 + $0x3a4] ss:$16 sps:$4 sm:$0xff]   ;;  %v2841_v59 = vld [vmem:[#allocation4 + $0x3ac] ss:$16 sps:$4 sm:$0xff]  }
  0x70   :  { %1638 = vmatpush1.bf16.msra.mxu0 %v2750_v60  ;;  %1802 = vmatpush1.bf16.msra.mxu1 %v2751_v61  ;;  %v2836_v60 = vld [vmem:[#allocation4 + $0x3a0] ss:$16 sps:$4 sm:$0xff]   ;;  %v2839_v61 = vld [vmem:[#allocation4 + $0x3a8] ss:$16 sps:$4 sm:$0xff]  }
  0x71   :  { %1639 = vmatprep.subr.bf16.mxu0 %v2752_v62  ;;  %1803 = vmatprep.subr.bf16.mxu1 %v2754_v63  ;;  %v2844_v62 = vld [vmem:[#allocation4 + $0x3c4] ss:$16 sps:$4 sm:$0xff]   ;;  %v2847_v63 = vld [vmem:[#allocation4 + $0x3cc] ss:$16 sps:$4 sm:$0xff]  }
  0x74   :  { %1640 = vmatpush1.bf16.msra.mxu0 %v2756_v0  ;;  %1804 = vmatpush1.bf16.msra.mxu1 %v2757_v1  ;;  %v2842_v0 = vld [vmem:[#allocation4 + $0x3c0] ss:$16 sps:$4 sm:$0xff]   ;;  %v2845_v1 = vld [vmem:[#allocation4 + $0x3c8] ss:$16 sps:$4 sm:$0xff]  }
  0x75   :  { %1650 = vmatprep.subr.bf16.mxu0 %v2760_v3  ;;  %1814 = vmatprep.subr.bf16.mxu1 %v2763_v4  ;;  %v2853_v3 = vld [vmem:[#allocation4 + $0x3ec] ss:$16 sps:$4 sm:$0xff]   ;;  %v2848_v4 = vld [vmem:[#allocation4 + $0x3e0] ss:$16 sps:$4 sm:$0xff]  }
  0x77   :  { %1642 = vmatmul.mubr.bf16.vlgmr.msra.gmra.mrb[0].mxu0 %v65_v5  ;;  %1806 = vmatmul.mubr.bf16.vlgmr.msra.gmra.mrb[0].mxu1 %v65_v5  ;;  %v2851_v5 = vld [vmem:[#allocation4 + $0x3e8] ss:$16 sps:$4 sm:$0xff]  }
  0x78   :  { %1651 = vmatpush1.bf16.msra.mxu0 %v2758_v6  ;;  %1815 = vmatpush1.bf16.msra.mxu1 %v2761_v7  ;;  %v2856_v6 = vld [vmem:[#allocation4 + $0x404] ss:$16 sps:$4 sm:$0xff]  }
  0x79   :  { %1652 = vmatprep.subr.bf16.mxu0 %v2766_v8  ;;  %1816 = vmatprep.subr.bf16.mxu1 %v2769_v9  ;;  %v59_v7 = vld [vmem:[#allocation2 + $0x10] sm:$0xff]  ;;  %v2859_v8 = vld [vmem:[#allocation4 + $0x40c] ss:$16 sps:$4 sm:$0xff]  }
  0x7a   :  { %1682 = vmatprep.mubr.bf16.mxu0 %v68_v32  ;;  %1846 = vmatprep.mubr.bf16.mxu1 %v68_v32  ;;  %v2854_v9 = vld [vmem:[#allocation4 + $0x400] ss:$16 sps:$4 sm:$0xff]  }
  0x7b   :  { %v2884_v32 = vld [vmem:[#allocation4 + $0x4a0] ss:$16 sps:$4 sm:$0xff]  }
  0x7c   :  { %1653 = vmatpush1.bf16.msra.mxu0 %v2764_v10  ;;  %1817 = vmatpush1.bf16.msra.mxu1 %v2767_v11  ;;  %v2857_v10 = vld [vmem:[#allocation4 + $0x408] ss:$16 sps:$4 sm:$0xff]   ;;  %v67_v11 = vpack.c.bf16 %v59_v7, %v59_v7  ;;  %v2949_v7 = vld [vmem:[#allocation4 + $0x5ec] ss:$16 sps:$4 sm:$0xff]  }
  0x7d   :  { %1654 = vmatprep.subr.bf16.mxu0 %v2772_v12  ;;  %1818 = vmatprep.subr.bf16.mxu1 %v2775_v13  ;;  %v2862_v12 = vld [vmem:[#allocation4 + $0x424] ss:$16 sps:$4 sm:$0xff]   ;;  %v2865_v13 = vld [vmem:[#allocation4 + $0x42c] ss:$16 sps:$4 sm:$0xff]  }
  0x80   :  { %1655 = vmatpush1.bf16.msra.mxu0 %v2770_v14  ;;  %1819 = vmatpush1.bf16.msra.mxu1 %v2773_v15  ;;  %v62_v14 = vld [vmem:[#allocation2 + $0x28] sm:$0xff] }
  0x81   :  { %1656 = vmatprep.subr.bf16.mxu0 %v2778_v16  ;;  %1820 = vmatprep.subr.bf16.mxu1 %v2781_v17  ;;  %v70_v15 = vpack.c.bf16 %v62_v14, %v62_v14  ;;  %v2860_v16 = vld [vmem:[#allocation4 + $0x420] ss:$16 sps:$4 sm:$0xff]   ;;  %v2863_v17 = vld [vmem:[#allocation4 + $0x428] ss:$16 sps:$4 sm:$0xff]  }
  0x82   :  { %v2953_v14 = vld [vmem:[#allocation4 + $0x608] ss:$16 sps:$4 sm:$0xff]  }
  0x84   :  { %1657 = vmatpush1.bf16.msra.mxu0 %v2776_v18  ;;  %1821 = vmatpush1.bf16.msra.mxu1 %v2779_v19  ;;  %v2868_v18 = vld [vmem:[#allocation4 + $0x444] ss:$16 sps:$4 sm:$0xff]   ;;  %v2871_v19 = vld [vmem:[#allocation4 + $0x44c] ss:$16 sps:$4 sm:$0xff]  }
  0x85   :  { %1658 = vmatprep.subr.bf16.mxu0 %v2784_v20  ;;  %1822 = vmatprep.subr.bf16.mxu1 %v2787_v21  ;;  %v2866_v20 = vld [vmem:[#allocation4 + $0x440] ss:$16 sps:$4 sm:$0xff]   ;;  %v2869_v21 = vld [vmem:[#allocation4 + $0x448] ss:$16 sps:$4 sm:$0xff]  }
  0x88   :  { %1659 = vmatpush1.bf16.msra.mxu0 %v2782_v22  ;;  %1823 = vmatpush1.bf16.msra.mxu1 %v2785_v23  ;;  %v2874_v22 = vld [vmem:[#allocation4 + $0x464] ss:$16 sps:$4 sm:$0xff]   ;;  %v2877_v23 = vld [vmem:[#allocation4 + $0x46c] ss:$16 sps:$4 sm:$0xff]  }
  0x89   :  { %1660 = vmatprep.subr.bf16.mxu0 %v2790_v24  ;;  %1824 = vmatprep.subr.bf16.mxu1 %v2793_v25  ;;  %v2872_v24 = vld [vmem:[#allocation4 + $0x460] ss:$16 sps:$4 sm:$0xff]   ;;  %v2875_v25 = vld [vmem:[#allocation4 + $0x468] ss:$16 sps:$4 sm:$0xff]  }
  0x8c   :  { %1661 = vmatpush1.bf16.msra.mxu0 %v2788_v26  ;;  %1825 = vmatpush1.bf16.msra.mxu1 %v2791_v27  ;;  %v2880_v26 = vld [vmem:[#allocation4 + $0x484] ss:$16 sps:$4 sm:$0xff]   ;;  %v2883_v27 = vld [vmem:[#allocation4 + $0x48c] ss:$16 sps:$4 sm:$0xff]  }
  0x8d   :  { %1662 = vmatprep.subr.bf16.mxu0 %v2796_v28  ;;  %1826 = vmatprep.subr.bf16.mxu1 %v2799_v29  ;;  %v2878_v28 = vld [vmem:[#allocation4 + $0x480] ss:$16 sps:$4 sm:$0xff]   ;;  %v2881_v29 = vld [vmem:[#allocation4 + $0x488] ss:$16 sps:$4 sm:$0xff]  }
  0x90   :  { %1663 = vmatpush1.bf16.msra.mxu0 %v2794_v31  ;;  %1827 = vmatpush1.bf16.msra.mxu1 %v2797_v33  ;;  %v2889_v31 = vld [vmem:[#allocation4 + $0x4ac] ss:$16 sps:$4 sm:$0xff]   ;;  %v2887_v33 = vld [vmem:[#allocation4 + $0x4a8] ss:$16 sps:$4 sm:$0xff]  }
  0x91   :  { %1664 = vmatprep.subr.bf16.mxu0 %v2802_v34  ;;  %1828 = vmatprep.subr.bf16.mxu1 %v2805_v35  ;;  %v2892_v34 = vld [vmem:[#allocation4 + $0x4c4] ss:$16 sps:$4 sm:$0xff]   ;;  %v2895_v35 = vld [vmem:[#allocation4 + $0x4cc] ss:$16 sps:$4 sm:$0xff]  }
  0x94   :  { %1665 = vmatpush1.bf16.msra.mxu0 %v2800_v36  ;;  %1829 = vmatpush1.bf16.msra.mxu1 %v2803_v37  ;;  %v2890_v36 = vld [vmem:[#allocation4 + $0x4c0] ss:$16 sps:$4 sm:$0xff]   ;;  %v2893_v37 = vld [vmem:[#allocation4 + $0x4c8] ss:$16 sps:$4 sm:$0xff]  }
  0x95   :  { %1666 = vmatprep.subr.bf16.mxu0 %v2808_v38  ;;  %1830 = vmatprep.subr.bf16.mxu1 %v2811_v39  ;;  %v2898_v38 = vld [vmem:[#allocation4 + $0x4e4] ss:$16 sps:$4 sm:$0xff]   ;;  %v2901_v39 = vld [vmem:[#allocation4 + $0x4ec] ss:$16 sps:$4 sm:$0xff]  }
  0x98   :  { %1667 = vmatpush1.bf16.msra.mxu0 %v2806_v40  ;;  %1831 = vmatpush1.bf16.msra.mxu1 %v2809_v41  ;;  %v2896_v40 = vld [vmem:[#allocation4 + $0x4e0] ss:$16 sps:$4 sm:$0xff]   ;;  %v2899_v41 = vld [vmem:[#allocation4 + $0x4e8] ss:$16 sps:$4 sm:$0xff]  }
  0x99   :  { %1668 = vmatprep.subr.bf16.mxu0 %v2814_v42  ;;  %1832 = vmatprep.subr.bf16.mxu1 %v2817_v43  ;;  %v2904_v42 = vld [vmem:[#allocation4 + $0x504] ss:$16 sps:$4 sm:$0xff]   ;;  %v2907_v43 = vld [vmem:[#allocation4 + $0x50c] ss:$16 sps:$4 sm:$0xff]  }
  0x9c   :  { %1669 = vmatpush1.bf16.msra.mxu0 %v2812_v44  ;;  %1833 = vmatpush1.bf16.msra.mxu1 %v2815_v45  ;;  %v2902_v44 = vld [vmem:[#allocation4 + $0x500] ss:$16 sps:$4 sm:$0xff]   ;;  %v2905_v45 = vld [vmem:[#allocation4 + $0x508] ss:$16 sps:$4 sm:$0xff]  }
  0x9d   :  { %1670 = vmatprep.subr.bf16.mxu0 %v2820_v46  ;;  %1834 = vmatprep.subr.bf16.mxu1 %v2823_v47  ;;  %v2910_v46 = vld [vmem:[#allocation4 + $0x524] ss:$16 sps:$4 sm:$0xff]   ;;  %v2913_v47 = vld [vmem:[#allocation4 + $0x52c] ss:$16 sps:$4 sm:$0xff]  }
  0xa0   :  { %1671 = vmatpush1.bf16.msra.mxu0 %v2818_v48  ;;  %1835 = vmatpush1.bf16.msra.mxu1 %v2821_v49  ;;  %v2908_v48 = vld [vmem:[#allocation4 + $0x520] ss:$16 sps:$4 sm:$0xff]   ;;  %v2911_v49 = vld [vmem:[#allocation4 + $0x528] ss:$16 sps:$4 sm:$0xff]  }
  0xa1   :  { %1672 = vmatprep.subr.bf16.mxu0 %v2826_v50  ;;  %1836 = vmatprep.subr.bf16.mxu1 %v2829_v51  ;;  %v2916_v50 = vld [vmem:[#allocation4 + $0x544] ss:$16 sps:$4 sm:$0xff]   ;;  %v2919_v51 = vld [vmem:[#allocation4 + $0x54c] ss:$16 sps:$4 sm:$0xff]  }
  0xa4   :  { %1673 = vmatpush1.bf16.msra.mxu0 %v2824_v52  ;;  %1837 = vmatpush1.bf16.msra.mxu1 %v2827_v53  ;;  %v2914_v52 = vld [vmem:[#allocation4 + $0x540] ss:$16 sps:$4 sm:$0xff]   ;;  %v2917_v53 = vld [vmem:[#allocation4 + $0x548] ss:$16 sps:$4 sm:$0xff]  }
  0xa5   :  { %1674 = vmatprep.subr.bf16.mxu0 %v2832_v54  ;;  %1838 = vmatprep.subr.bf16.mxu1 %v2835_v55  ;;  %v2922_v54 = vld [vmem:[#allocation4 + $0x564] ss:$16 sps:$4 sm:$0xff]   ;;  %v2925_v55 = vld [vmem:[#allocation4 + $0x56c] ss:$16 sps:$4 sm:$0xff]  }
  0xa8   :  { %1675 = vmatpush1.bf16.msra.mxu0 %v2830_v56  ;;  %1839 = vmatpush1.bf16.msra.mxu1 %v2833_v57  ;;  %v2920_v56 = vld [vmem:[#allocation4 + $0x560] ss:$16 sps:$4 sm:$0xff]   ;;  %v2923_v57 = vld [vmem:[#allocation4 + $0x568] ss:$16 sps:$4 sm:$0xff]  }
  0xa9   :  { %1676 = vmatprep.subr.bf16.mxu0 %v2838_v58  ;;  %1840 = vmatprep.subr.bf16.mxu1 %v2841_v59  ;;  %v2928_v58 = vld [vmem:[#allocation4 + $0x584] ss:$16 sps:$4 sm:$0xff]   ;;  %v2931_v59 = vld [vmem:[#allocation4 + $0x58c] ss:$16 sps:$4 sm:$0xff]  }
  0xac   :  { %1677 = vmatpush1.bf16.msra.mxu0 %v2836_v60  ;;  %1841 = vmatpush1.bf16.msra.mxu1 %v2839_v61  ;;  %v2926_v60 = vld [vmem:[#allocation4 + $0x580] ss:$16 sps:$4 sm:$0xff]   ;;  %v2929_v61 = vld [vmem:[#allocation4 + $0x588] ss:$16 sps:$4 sm:$0xff]  }
  0xad   :  { %1678 = vmatprep.subr.bf16.mxu0 %v2844_v62  ;;  %1842 = vmatprep.subr.bf16.mxu1 %v2847_v63  ;;  %v2934_v62 = vld [vmem:[#allocation4 + $0x5a4] ss:$16 sps:$4 sm:$0xff]   ;;  %v2937_v63 = vld [vmem:[#allocation4 + $0x5ac] ss:$16 sps:$4 sm:$0xff]  }
  0xb0   :  { %1679 = vmatpush1.bf16.msra.mxu0 %v2842_v0  ;;  %1843 = vmatpush1.bf16.msra.mxu1 %v2845_v1  ;;  %v2932_v0 = vld [vmem:[#allocation4 + $0x5a0] ss:$16 sps:$4 sm:$0xff]   ;;  %v2935_v1 = vld [vmem:[#allocation4 + $0x5a8] ss:$16 sps:$4 sm:$0xff]  }
  0xb1   :  { %1680 = vmatprep.subr.bf16.mxu0 %v2850_v2  ;;  %1844 = vmatprep.subr.bf16.mxu1 %v2853_v3  ;;  %v2940_v2 = vld [vmem:[#allocation4 + $0x5c4] ss:$16 sps:$4 sm:$0xff]   ;;  %v2943_v3 = vld [vmem:[#allocation4 + $0x5cc] ss:$16 sps:$4 sm:$0xff]  }
  0xb4   :  { %1681 = vmatpush1.bf16.msra.mxu0 %v2848_v4  ;;  %1845 = vmatpush1.bf16.msra.mxu1 %v2851_v5  ;;  %v2938_v4 = vld [vmem:[#allocation4 + $0x5c0] ss:$16 sps:$4 sm:$0xff]   ;;  %v2941_v5 = vld [vmem:[#allocation4 + $0x5c8] ss:$16 sps:$4 sm:$0xff]  }
  0xb5   :  { %1691 = vmatprep.subr.bf16.mxu0 %v2856_v6  ;;  %1855 = vmatprep.subr.bf16.mxu1 %v2859_v8  ;;  %v2946_v6 = vld [vmem:[#allocation4 + $0x5e4] ss:$16 sps:$4 sm:$0xff]   ;;  %v2944_v8 = vld [vmem:[#allocation4 + $0x5e0] ss:$16 sps:$4 sm:$0xff]  }
  0xb7   :  { %1683 = vmatmul.mubr.bf16.vlgmr.msra.gmra.mrb[0].mxu0 %v67_v11  ;;  %1847 = vmatmul.mubr.bf16.vlgmr.msra.gmra.mrb[0].mxu1 %v67_v11  ;;  %v61_v11 = vld [vmem:[#allocation2 + $0x20] sm:$0xff] }
  0xb8   :  { %1692 = vmatpush1.bf16.msra.mxu0 %v2854_v9  ;;  %1856 = vmatpush1.bf16.msra.mxu1 %v2857_v10  ;;  %v2947_v9 = vld [vmem:[#allocation4 + $0x5e8] ss:$16 sps:$4 sm:$0xff]   ;;  %v2952_v10 = vld [vmem:[#allocation4 + $0x604] ss:$16 sps:$4 sm:$0xff]  }
  0xb9   :  { %1693 = vmatprep.subr.bf16.mxu0 %v2862_v12  ;;  %1857 = vmatprep.subr.bf16.mxu1 %v2865_v13  ;;  %v2955_v12 = vld [vmem:[#allocation4 + $0x60c] ss:$16 sps:$4 sm:$0xff]   ;;  %v2950_v13 = vld [vmem:[#allocation4 + $0x600] ss:$16 sps:$4 sm:$0xff]  }
  0xba   :  { %1723 = vmatprep.mubr.bf16.mxu0 %v70_v15  ;;  %1887 = vmatprep.mubr.bf16.mxu1 %v70_v15  ;;  %v69_v15 = vpack.c.bf16 %v61_v11, %v61_v11  ;;  %v3045_v11 = vld [vmem:[#allocation4 + $0x7ec] ss:$16 sps:$4 sm:$0xff]  }
  0xbc   :  { %1694 = vmatpush1.bf16.msra.mxu0 %v2860_v16  ;;  %1858 = vmatpush1.bf16.msra.mxu1 %v2863_v17  ;;  %v64_v16 = vld [vmem:[#allocation2 + $0x38] sm:$0xff]  ;;  %v2958_v17 = vld [vmem:[#allocation4 + $0x624] ss:$16 sps:$4 sm:$0xff]  }
  0xbd   :  { %1695 = vmatprep.subr.bf16.mxu0 %v2868_v18  ;;  %1859 = vmatprep.subr.bf16.mxu1 %v2871_v19  ;;  %v2961_v18 = vld [vmem:[#allocation4 + $0x62c] ss:$16 sps:$4 sm:$0xff]   ;;  %v2956_v19 = vld [vmem:[#allocation4 + $0x620] ss:$16 sps:$4 sm:$0xff]  }
  0xc0   :  { %1696 = vmatpush1.bf16.msra.mxu0 %v2866_v20  ;;  %1860 = vmatpush1.bf16.msra.mxu1 %v2869_v21  ;;  %v72_v20 = vpack.c.bf16 %v64_v16, %v64_v16  ;;  %v2959_v21 = vld [vmem:[#allocation4 + $0x628] ss:$16 sps:$4 sm:$0xff]   ;;  %v3047_v16 = vld [vmem:[#allocation6 + $0xc0] sm:$0xff]  }
  0xc1   :  { %1697 = vmatprep.subr.bf16.mxu0 %v2874_v22  ;;  %1861 = vmatprep.subr.bf16.mxu1 %v2877_v23  ;;  %v2964_v22 = vld [vmem:[#allocation4 + $0x644] ss:$16 sps:$4 sm:$0xff]   ;;  %v2967_v23 = vld [vmem:[#allocation4 + $0x64c] ss:$16 sps:$4 sm:$0xff]  }
  0xc4   :  { %1698 = vmatpush1.bf16.msra.mxu0 %v2872_v24  ;;  %1862 = vmatpush1.bf16.msra.mxu1 %v2875_v25  ;;  %v2962_v24 = vld [vmem:[#allocation4 + $0x640] ss:$16 sps:$4 sm:$0xff]   ;;  %v2965_v25 = vld [vmem:[#allocation4 + $0x648] ss:$16 sps:$4 sm:$0xff]  }
  0xc5   :  { %1699 = vmatprep.subr.bf16.mxu0 %v2880_v26  ;;  %1863 = vmatprep.subr.bf16.mxu1 %v2883_v27  ;;  %v2970_v26 = vld [vmem:[#allocation4 + $0x664] ss:$16 sps:$4 sm:$0xff]   ;;  %v2973_v27 = vld [vmem:[#allocation4 + $0x66c] ss:$16 sps:$4 sm:$0xff]  }
  0xc8   :  { %1700 = vmatpush1.bf16.msra.mxu0 %v2878_v28  ;;  %1864 = vmatpush1.bf16.msra.mxu1 %v2881_v29  ;;  %v2968_v28 = vld [vmem:[#allocation4 + $0x660] ss:$16 sps:$4 sm:$0xff]   ;;  %v2971_v29 = vld [vmem:[#allocation4 + $0x668] ss:$16 sps:$4 sm:$0xff]  }
  0xc9   :  { %1701 = vmatprep.subr.bf16.mxu0 %v2886_v30  ;;  %1865 = vmatprep.subr.bf16.mxu1 %v2889_v31  ;;  %v2976_v30 = vld [vmem:[#allocation4 + $0x684] ss:$16 sps:$4 sm:$0xff]   ;;  %v2979_v31 = vld [vmem:[#allocation4 + $0x68c] ss:$16 sps:$4 sm:$0xff]  }
  0xcc   :  { %1702 = vmatpush1.bf16.msra.mxu0 %v2884_v32  ;;  %1866 = vmatpush1.bf16.msra.mxu1 %v2887_v33  ;;  %v2974_v32 = vld [vmem:[#allocation4 + $0x680] ss:$16 sps:$4 sm:$0xff]   ;;  %v2977_v33 = vld [vmem:[#allocation4 + $0x688] ss:$16 sps:$4 sm:$0xff]  }
  0xcd   :  { %1703 = vmatprep.subr.bf16.mxu0 %v2892_v34  ;;  %1867 = vmatprep.subr.bf16.mxu1 %v2895_v35  ;;  %v2982_v34 = vld [vmem:[#allocation4 + $0x6a4] ss:$16 sps:$4 sm:$0xff]   ;;  %v2985_v35 = vld [vmem:[#allocation4 + $0x6ac] ss:$16 sps:$4 sm:$0xff]  }
  0xd0   :  { %1704 = vmatpush1.bf16.msra.mxu0 %v2890_v36  ;;  %1868 = vmatpush1.bf16.msra.mxu1 %v2893_v37  ;;  %v2980_v36 = vld [vmem:[#allocation4 + $0x6a0] ss:$16 sps:$4 sm:$0xff]   ;;  %v2983_v37 = vld [vmem:[#allocation4 + $0x6a8] ss:$16 sps:$4 sm:$0xff]  }
  0xd1   :  { %1705 = vmatprep.subr.bf16.mxu0 %v2898_v38  ;;  %1869 = vmatprep.subr.bf16.mxu1 %v2901_v39  ;;  %v2988_v38 = vld [vmem:[#allocation4 + $0x6c4] ss:$16 sps:$4 sm:$0xff]   ;;  %v2991_v39 = vld [vmem:[#allocation4 + $0x6cc] ss:$16 sps:$4 sm:$0xff]  }
  0xd4   :  { %1706 = vmatpush1.bf16.msra.mxu0 %v2896_v40  ;;  %1870 = vmatpush1.bf16.msra.mxu1 %v2899_v41  ;;  %v2986_v40 = vld [vmem:[#allocation4 + $0x6c0] ss:$16 sps:$4 sm:$0xff]   ;;  %v2989_v41 = vld [vmem:[#allocation4 + $0x6c8] ss:$16 sps:$4 sm:$0xff]  }
  0xd5   :  { %1707 = vmatprep.subr.bf16.mxu0 %v2904_v42  ;;  %1871 = vmatprep.subr.bf16.mxu1 %v2907_v43  ;;  %v2994_v42 = vld [vmem:[#allocation4 + $0x6e4] ss:$16 sps:$4 sm:$0xff]   ;;  %v2997_v43 = vld [vmem:[#allocation4 + $0x6ec] ss:$16 sps:$4 sm:$0xff]  }
  0xd8   :  { %1708 = vmatpush1.bf16.msra.mxu0 %v2902_v44  ;;  %1872 = vmatpush1.bf16.msra.mxu1 %v2905_v45  ;;  %v2992_v44 = vld [vmem:[#allocation4 + $0x6e0] ss:$16 sps:$4 sm:$0xff]   ;;  %v2995_v45 = vld [vmem:[#allocation4 + $0x6e8] ss:$16 sps:$4 sm:$0xff]  }
  0xd9   :  { %1709 = vmatprep.subr.bf16.mxu0 %v2910_v46  ;;  %1873 = vmatprep.subr.bf16.mxu1 %v2913_v47  ;;  %v3000_v46 = vld [vmem:[#allocation4 + $0x704] ss:$16 sps:$4 sm:$0xff]   ;;  %v3003_v47 = vld [vmem:[#allocation4 + $0x70c] ss:$16 sps:$4 sm:$0xff]  }
  0xdc   :  { %1710 = vmatpush1.bf16.msra.mxu0 %v2908_v48  ;;  %1874 = vmatpush1.bf16.msra.mxu1 %v2911_v49  ;;  %v2998_v48 = vld [vmem:[#allocation4 + $0x700] ss:$16 sps:$4 sm:$0xff]   ;;  %v3001_v49 = vld [vmem:[#allocation4 + $0x708] ss:$16 sps:$4 sm:$0xff]  }
  0xdd   :  { %1711 = vmatprep.subr.bf16.mxu0 %v2916_v50  ;;  %1875 = vmatprep.subr.bf16.mxu1 %v2919_v51  ;;  %v3006_v50 = vld [vmem:[#allocation4 + $0x724] ss:$16 sps:$4 sm:$0xff]   ;;  %v3009_v51 = vld [vmem:[#allocation4 + $0x72c] ss:$16 sps:$4 sm:$0xff]  }
  0xe0   :  { %1712 = vmatpush1.bf16.msra.mxu0 %v2914_v52  ;;  %1876 = vmatpush1.bf16.msra.mxu1 %v2917_v53  ;;  %v3004_v52 = vld [vmem:[#allocation4 + $0x720] ss:$16 sps:$4 sm:$0xff]   ;;  %v3007_v53 = vld [vmem:[#allocation4 + $0x728] ss:$16 sps:$4 sm:$0xff]  }
  0xe1   :  { %1713 = vmatprep.subr.bf16.mxu0 %v2922_v54  ;;  %1877 = vmatprep.subr.bf16.mxu1 %v2925_v55  ;;  %v3012_v54 = vld [vmem:[#allocation4 + $0x744] ss:$16 sps:$4 sm:$0xff]   ;;  %v3015_v55 = vld [vmem:[#allocation4 + $0x74c] ss:$16 sps:$4 sm:$0xff]  }
  0xe4   :  { %1714 = vmatpush1.bf16.msra.mxu0 %v2920_v56  ;;  %1878 = vmatpush1.bf16.msra.mxu1 %v2923_v57  ;;  %v3010_v56 = vld [vmem:[#allocation4 + $0x740] ss:$16 sps:$4 sm:$0xff]   ;;  %v3013_v57 = vld [vmem:[#allocation4 + $0x748] ss:$16 sps:$4 sm:$0xff]  }
  0xe5   :  { %1715 = vmatprep.subr.bf16.mxu0 %v2928_v58  ;;  %1879 = vmatprep.subr.bf16.mxu1 %v2931_v59  ;;  %v3018_v58 = vld [vmem:[#allocation4 + $0x764] ss:$16 sps:$4 sm:$0xff]   ;;  %v3021_v59 = vld [vmem:[#allocation4 + $0x76c] ss:$16 sps:$4 sm:$0xff]  }
  0xe8   :  { %1716 = vmatpush1.bf16.msra.mxu0 %v2926_v60  ;;  %1880 = vmatpush1.bf16.msra.mxu1 %v2929_v61  ;;  %v3016_v60 = vld [vmem:[#allocation4 + $0x760] ss:$16 sps:$4 sm:$0xff]   ;;  %v3019_v61 = vld [vmem:[#allocation4 + $0x768] ss:$16 sps:$4 sm:$0xff]  }
  0xe9   :  { %1717 = vmatprep.subr.bf16.mxu0 %v2934_v62  ;;  %1881 = vmatprep.subr.bf16.mxu1 %v2937_v63  ;;  %v3024_v62 = vld [vmem:[#allocation4 + $0x784] ss:$16 sps:$4 sm:$0xff]   ;;  %v3027_v63 = vld [vmem:[#allocation4 + $0x78c] ss:$16 sps:$4 sm:$0xff]  }
  0xec   :  { %1718 = vmatpush1.bf16.msra.mxu0 %v2932_v0  ;;  %1882 = vmatpush1.bf16.msra.mxu1 %v2935_v1  ;;  %v3022_v0 = vld [vmem:[#allocation4 + $0x780] ss:$16 sps:$4 sm:$0xff]   ;;  %v3025_v1 = vld [vmem:[#allocation4 + $0x788] ss:$16 sps:$4 sm:$0xff]  }
  0xed   :  { %1719 = vmatprep.subr.bf16.mxu0 %v2940_v2  ;;  %1883 = vmatprep.subr.bf16.mxu1 %v2943_v3  ;;  %v3030_v2 = vld [vmem:[#allocation4 + $0x7a4] ss:$16 sps:$4 sm:$0xff]   ;;  %v3033_v3 = vld [vmem:[#allocation4 + $0x7ac] ss:$16 sps:$4 sm:$0xff]  }
  0xf0   :  { %1720 = vmatpush1.bf16.msra.mxu0 %v2938_v4  ;;  %1884 = vmatpush1.bf16.msra.mxu1 %v2941_v5  ;;  %v3028_v4 = vld [vmem:[#allocation4 + $0x7a0] ss:$16 sps:$4 sm:$0xff]   ;;  %v3031_v5 = vld [vmem:[#allocation4 + $0x7a8] ss:$16 sps:$4 sm:$0xff]  }
  0xf1   :  { %1721 = vmatprep.subr.bf16.mxu0 %v2946_v6  ;;  %1885 = vmatprep.subr.bf16.mxu1 %v2949_v7  ;;  %v3036_v6 = vld [vmem:[#allocation4 + $0x7c4] ss:$16 sps:$4 sm:$0xff]   ;;  %v3039_v7 = vld [vmem:[#allocation4 + $0x7cc] ss:$16 sps:$4 sm:$0xff]  }
  0xf4   :  { %1722 = vmatpush1.bf16.msra.mxu0 %v2944_v8  ;;  %1886 = vmatpush1.bf16.msra.mxu1 %v2947_v9  ;;  %v3034_v8 = vld [vmem:[#allocation4 + $0x7c0] ss:$16 sps:$4 sm:$0xff]   ;;  %v3037_v9 = vld [vmem:[#allocation4 + $0x7c8] ss:$16 sps:$4 sm:$0xff]  }
  0xf5   :  { %1732 = vmatprep.subr.bf16.mxu0 %v2952_v10  ;;  %1896 = vmatprep.subr.bf16.mxu1 %v2955_v12  ;;  %v3042_v10 = vld [vmem:[#allocation4 + $0x7e4] ss:$16 sps:$4 sm:$0xff]   ;;  %v3040_v12 = vld [vmem:[#allocation4 + $0x7e0] ss:$16 sps:$4 sm:$0xff]  }
  0xf7   :  { %1724 = vmatmul.mubr.bf16.vlgmr.msra.gmra.mrb[0].mxu0 %v69_v15  ;;  %1888 = vmatmul.mubr.bf16.vlgmr.msra.gmra.mrb[0].mxu1 %v69_v15  ;;  %v3046_v15 = vld [vmem:[#allocation6 + $0x40] sm:$0xff]  }
  0xf8   :  { %1733 = vmatpush1.bf16.msra.mxu0 %v2950_v13  ;;  %1897 = vmatpush1.bf16.msra.mxu1 %v2953_v14  ;;  %v3043_v13 = vld [vmem:[#allocation4 + $0x7e8] ss:$16 sps:$4 sm:$0xff]   ;;  %v63_v14 = vld [vmem:[#allocation2 + $0x30] sm:$0xff] }
  0xf9   :  { %1734 = vmatprep.subr.bf16.mxu0 %v2958_v17  ;;  %1898 = vmatprep.subr.bf16.mxu1 %v2961_v18  ;;  %v71_v17 = vpack.c.bf16 %v63_v14, %v63_v14  ;;  %v3048_v18 = vld [vmem:[#allocation6] sm:$0xff]  }
  0xfa   :  { %1764 = vmatprep.mubr.bf16.mxu0 %v72_v20  ;;  %1928 = vmatprep.mubr.bf16.mxu1 %v72_v20  ;;  %v3050_v20 = vld [vmem:[#allocation6 + $0x48] sm:$0xff]  }
  0xfc   :  { %1735 = vmatpush1.bf16.msra.mxu0 %v2956_v19  ;;  %1899 = vmatpush1.bf16.msra.mxu1 %v2959_v21  ;;  %v3049_v19 = vld [vmem:[#allocation6 + $0x80] sm:$0xff]   ;;  %v3051_v21 = vld [vmem:[#allocation6 + $0xc8] sm:$0xff]  }
  0xfd   :  { %1736 = vmatprep.subr.bf16.mxu0 %v2964_v22  ;;  %1900 = vmatprep.subr.bf16.mxu1 %v2967_v23  ;;  %v3052_v22 = vld [vmem:[#allocation6 + $0x8] sm:$0xff]  }
  0xfe   :  { %v3053_v23 = vld [vmem:[#allocation6 + $0x88] sm:$0xff]  }
 0x100   :  { %1737 = vmatpush1.bf16.msra.mxu0 %v2962_v24  ;;  %1901 = vmatpush1.bf16.msra.mxu1 %v2965_v25  ;;  %v3054_v24 = vld [vmem:[#allocation6 + $0x50] sm:$0xff]  }
 0x101   :  { %1738 = vmatprep.subr.bf16.mxu0 %v2970_v26  ;;  %1902 = vmatprep.subr.bf16.mxu1 %v2973_v27  ;;  %v3055_v25 = vld [vmem:[#allocation6 + $0xd0] sm:$0xff]  }
 0x102   :  { %v3056_v26 = vld [vmem:[#allocation6 + $0x10] sm:$0xff]  }
 0x103   :  { %v3057_v27 = vld [vmem:[#allocation6 + $0x90] sm:$0xff]  }
 0x104   :  { %1739 = vmatpush1.bf16.msra.mxu0 %v2968_v28  ;;  %1903 = vmatpush1.bf16.msra.mxu1 %v2971_v29  ;;  %v3058_v28 = vld [vmem:[#allocation6 + $0x58] sm:$0xff]  }
 0x105   :  { %1740 = vmatprep.subr.bf16.mxu0 %v2976_v30  ;;  %1904 = vmatprep.subr.bf16.mxu1 %v2979_v31  ;;  %v3059_v29 = vld [vmem:[#allocation6 + $0xd8] sm:$0xff]  }
 0x106   :  { %v3060_v30 = vld [vmem:[#allocation6 + $0x18] sm:$0xff]  }
 0x107   :  { %v3061_v31 = vld [vmem:[#allocation6 + $0x98] sm:$0xff]  }
 0x108   :  { %1741 = vmatpush1.bf16.msra.mxu0 %v2974_v32  ;;  %1905 = vmatpush1.bf16.msra.mxu1 %v2977_v33  ;;  %v3062_v32 = vld [vmem:[#allocation6 + $0x60] sm:$0xff]  }
 0x109   :  { %1742 = vmatprep.subr.bf16.mxu0 %v2982_v34  ;;  %1906 = vmatprep.subr.bf16.mxu1 %v2985_v35  ;;  %v3063_v33 = vld [vmem:[#allocation6 + $0xe0] sm:$0xff]  }
 0x10a   :  { %v3064_v34 = vld [vmem:[#allocation6 + $0x20] sm:$0xff]  }
 0x10b   :  { %v3065_v35 = vld [vmem:[#allocation6 + $0xa0] sm:$0xff]  }
 0x10c   :  { %1743 = vmatpush1.bf16.msra.mxu0 %v2980_v36  ;;  %1907 = vmatpush1.bf16.msra.mxu1 %v2983_v37  ;;  %v3066_v36 = vld [vmem:[#allocation6 + $0x68] sm:$0xff]  }
 0x10d   :  { %1744 = vmatprep.subr.bf16.mxu0 %v2988_v38  ;;  %1908 = vmatprep.subr.bf16.mxu1 %v2991_v39  ;;  %v3067_v37 = vld [vmem:[#allocation6 + $0xe8] sm:$0xff]  }
 0x10e   :  { %v3068_v38 = vld [vmem:[#allocation6 + $0x28] sm:$0xff]  }
 0x10f   :  { %v3069_v39 = vld [vmem:[#allocation6 + $0xa8] sm:$0xff]  }
 0x110   :  { %1745 = vmatpush1.bf16.msra.mxu0 %v2986_v40  ;;  %1909 = vmatpush1.bf16.msra.mxu1 %v2989_v41  ;;  %v3070_v40 = vld [vmem:[#allocation6 + $0x70] sm:$0xff]  }
 0x111   :  { %1746 = vmatprep.subr.bf16.mxu0 %v2994_v42  ;;  %1910 = vmatprep.subr.bf16.mxu1 %v2997_v43  ;;  %v3071_v41 = vld [vmem:[#allocation6 + $0xf0] sm:$0xff]  }
 0x112   :  { %v3072_v42 = vld [vmem:[#allocation6 + $0x30] sm:$0xff]  }
 0x113   :  { %v3073_v43 = vld [vmem:[#allocation6 + $0xb0] sm:$0xff]  }
 0x114   :  { %1747 = vmatpush1.bf16.msra.mxu0 %v2992_v44  ;;  %1911 = vmatpush1.bf16.msra.mxu1 %v2995_v45  ;;  %v3074_v44 = vld [vmem:[#allocation6 + $0x78] sm:$0xff]  }
 0x115   :  { %1748 = vmatprep.subr.bf16.mxu0 %v3000_v46  ;;  %1912 = vmatprep.subr.bf16.mxu1 %v3003_v47  ;;  %v3075_v45 = vld [vmem:[#allocation6 + $0xf8] sm:$0xff]  }
 0x116   :  { %v3076_v46 = vld [vmem:[#allocation6 + $0x38] sm:$0xff]  }
 0x117   :  { %v3077_v47 = vld [vmem:[#allocation6 + $0xb8] sm:$0xff]  }
 0x118   :  { %1749 = vmatpush1.bf16.msra.mxu0 %v2998_v48  ;;  %1913 = vmatpush1.bf16.msra.mxu1 %v3001_v49 }
 0x119   :  { %1750 = vmatprep.subr.bf16.mxu0 %v3006_v50  ;;  %1914 = vmatprep.subr.bf16.mxu1 %v3009_v51 }
 0x11c   :  { %1751 = vmatpush1.bf16.msra.mxu0 %v3004_v52  ;;  %1915 = vmatpush1.bf16.msra.mxu1 %v3007_v53 }
 0x11d   :  { %1752 = vmatprep.subr.bf16.mxu0 %v3012_v54  ;;  %1916 = vmatprep.subr.bf16.mxu1 %v3015_v55 }
 0x120   :  { %1753 = vmatpush1.bf16.msra.mxu0 %v3010_v56  ;;  %1917 = vmatpush1.bf16.msra.mxu1 %v3013_v57 }
 0x121   :  { %1754 = vmatprep.subr.bf16.mxu0 %v3018_v58  ;;  %1918 = vmatprep.subr.bf16.mxu1 %v3021_v59 }
 0x124   :  { %1755 = vmatpush1.bf16.msra.mxu0 %v3016_v60  ;;  %1919 = vmatpush1.bf16.msra.mxu1 %v3019_v61 }
 0x125   :  { %1756 = vmatprep.subr.bf16.mxu0 %v3024_v62  ;;  %1920 = vmatprep.subr.bf16.mxu1 %v3027_v63 }
 0x128   :  { %1757 = vmatpush1.bf16.msra.mxu0 %v3022_v0  ;;  %1921 = vmatpush1.bf16.msra.mxu1 %v3025_v1  ;;  %v2284_v0 = vlaneseq }
 0x129   :  { %1758 = vmatprep.subr.bf16.mxu0 %v3030_v2  ;;  %1922 = vmatprep.subr.bf16.mxu1 %v3033_v3  ;;  %v2282_v2 = vld [vmem:[%s3225_s3] sm:$0x1] }
 0x12a   :  { %v2285_v1 = vshrl.u32 %v2284_v0, 7 }
 0x12c   :  { %1759 = vmatpush1.bf16.msra.mxu0 %v3028_v4  ;;  %1923 = vmatpush1.bf16.msra.mxu1 %v3031_v5  ;;  %v2283_v5 = vunpack.c.l.bf16 %v2282_v2 }
 0x12d   :  { %1760 = vmatprep.subr.bf16.mxu0 %v3036_v6  ;;  %1924 = vmatprep.subr.bf16.mxu1 %v3039_v7  ;;  %v2286_v6 = vsub.s32 0, %v2285_v1 }
 0x130   :  { %1761 = vmatpush1.bf16.msra.mxu0 %v3034_v8  ;;  %1925 = vmatpush1.bf16.msra.mxu1 %v3037_v9 }
 0x131   :  { %1762 = vmatprep.subr.bf16.mxu0 %v3042_v10  ;;  %1926 = vmatprep.subr.bf16.mxu1 %v3045_v11 }
 0x134   :  { %1763 = vmatpush1.bf16.msra.mxu0 %v3040_v12  ;;  %1927 = vmatpush1.bf16.msra.mxu1 %v3043_v13 }
 0x135   :  { %2587 = vmatprep.subr.bf16.mxu0 %v3046_v15  ;;  %2609 = vmatprep.subr.bf16.mxu1 %v3047_v16  ;;  %v2287_v16 = vrot.slane %v2283_v5, %v2286_v6 }
 0x137   :  { %1765 = vmatmul.mubr.bf16.vlgmr.msra.gmra.mrb[0].mxu0 %v71_v17  ;;  %1929 = vmatmul.mubr.bf16.vlgmr.msra.gmra.mrb[0].mxu1 %v71_v17 }
 0x138   :  { %2588 = vmatpush3.bf16.msra.mxu0 %v3048_v18  ;;  %2610 = vmatpush3.bf16.msra.mxu1 %v3049_v19 }
 0x139   :  { %2589 = vmatprep.subr.bf16.mxu0 %v3050_v20  ;;  %2611 = vmatprep.subr.bf16.mxu1 %v3051_v21 }
 0x13c   :  { %2590 = vmatpush3.bf16.msra.mxu0 %v3052_v22  ;;  %2612 = vmatpush3.bf16.msra.mxu1 %v3053_v23 }
 0x13d   :  { %2591 = vmatprep.subr.bf16.mxu0 %v3054_v24  ;;  %2613 = vmatprep.subr.bf16.mxu1 %v3055_v25 }
 0x140   :  { %2592 = vmatpush3.bf16.msra.mxu0 %v3056_v26  ;;  %2614 = vmatpush3.bf16.msra.mxu1 %v3057_v27 }
 0x141   :  { %2593 = vmatprep.subr.bf16.mxu0 %v3058_v28  ;;  %2615 = vmatprep.subr.bf16.mxu1 %v3059_v29 }
 0x144   :  { %2594 = vmatpush3.bf16.msra.mxu0 %v3060_v30  ;;  %2616 = vmatpush3.bf16.msra.mxu1 %v3061_v31 }
 0x145   :  { %2595 = vmatprep.subr.bf16.mxu0 %v3062_v32  ;;  %2617 = vmatprep.subr.bf16.mxu1 %v3063_v33 }
 0x148   :  { %2596 = vmatpush3.bf16.msra.mxu0 %v3064_v34  ;;  %2618 = vmatpush3.bf16.msra.mxu1 %v3065_v35 }
 0x149   :  { %2597 = vmatprep.subr.bf16.mxu0 %v3066_v36  ;;  %2619 = vmatprep.subr.bf16.mxu1 %v3067_v37 }
 0x14c   :  { %2598 = vmatpush3.bf16.msra.mxu0 %v3068_v38  ;;  %2620 = vmatpush3.bf16.msra.mxu1 %v3069_v39 }
 0x14d   :  { %2599 = vmatprep.subr.bf16.mxu0 %v3070_v40  ;;  %2621 = vmatprep.subr.bf16.mxu1 %v3071_v41 }
 0x150   :  { %2600 = vmatpush3.bf16.msra.mxu0 %v3072_v42  ;;  %2622 = vmatpush3.bf16.msra.mxu1 %v3073_v43 }
 0x151   :  { %2601 = vmatprep.subr.bf16.mxu0 %v3074_v44  ;;  %2623 = vmatprep.subr.bf16.mxu1 %v3075_v45 }
 0x154   :  { %2602 = vmatpush3.bf16.msra.mxu0 %v3076_v46  ;;  %2624 = vmatpush3.bf16.msra.mxu1 %v3077_v47 }
 0x20a   :  { %v1766_v48 = vpop.f32.mrb[0].mxu0  ;;  %v1930_v49 = vpop.f32.mrb[0].mxu1 }
 0x20b   :  { %v1937_v50 = vmax.f32 %v1766_v48, 0.0  ;;  %v1939_v51 = vmax.f32 %v1930_v49, 0.0  ;;  %v1768_v52 = vpop.f32.mrb[1].mxu0  ;;  %v1932_v53 = vpop.f32.mrb[1].mxu1 }
 0x20c   :  { %v1938_v54 = vmax.f32 %v1768_v52, 0.0  ;;  %v1940_v55 = vmax.f32 %v1932_v53, 0.0  ;;  %v1770_v56 = vpop.f32.mrb[2].mxu0  ;;  %v1934_v57 = vpop.f32.mrb[2].mxu1 }
 0x20d   :  { %v1771_v58 = vpop.f32.mrb[3].mxu0  ;;  %v1935_v59 = vpop.f32.mrb[3].mxu1  ;;  %v1941_v62 = vpack.c.bf16 %v1937_v50, %v1937_v50  ;;  %v1943_v63 = vpack.c.bf16 %v1939_v51, %v1939_v51 }
 0x20e   :  { %v1942_v60 = vpack.c.bf16 %v1938_v54, %v1938_v54  ;;  %v1944_v61 = vpack.c.bf16 %v1940_v55, %v1940_v55 }
 0x210   :  { %2233 = vmatprep.mubr.bf16.mxu0 %v1942_v60  ;;  %2273 = vmatprep.mubr.bf16.mxu1 %v1944_v61 }
 0x211   :  { %2234 = vmatmul.mubr.bf16.vlgmr.msra.gmra.mrb[4].mxu0 %v1941_v62  ;;  %2274 = vmatmul.mubr.bf16.vlgmr.msra.gmra.mrb[4].mxu1 %v1943_v63 }
 0x2e4   :  { %v2603_v3 = vpop.f32.mrb[4].mxu0  ;;  %v2625_v4 = vpop.f32.mrb[4].mxu1 }
 0x2e5   :  { %v2604_v7 = vpop.f32.mrb[5].mxu0  ;;  %v2626_v8 = vpop.f32.mrb[5].mxu1 }
 0x2e6   :  { %v2605_v9 = vadd.f32 %v2604_v7, %v2603_v3  ;;  %v2627_v10 = vadd.f32 %v2626_v8, %v2625_v4  ;;  %v2606_v11 = vpop.f32.mrb[6].mxu0  ;;  %v2628_v12 = vpop.f32.mrb[6].mxu1 }
 0x2e7   :  { %v2607_v13 = vpop.f32.mrb[7].mxu0  ;;  %v2629_v14 = vpop.f32.mrb[7].mxu1 }
 0x2e8   :  { %v2276_v15 = vadd.f32 %v2627_v10, %v2605_v9 }
 0x2ea   :  { %v2281_v17 = vmax.f32 %v2276_v15, 0.0 }
 0x2ec   :  { %v2288_v18 = vmul.f32 %v2287_v16, %v2281_v17 }
 0x2ee   :  { %2289 = vadd.xlane.f32.xlu0 %v2288_v18 }
 0x37b   :  { %v2290_v19 = vpop.xlane.xlu0 %2289 }
 0x37c   :  { %2292 = vst.msk [vmem:[%s3226_s4] sm:$0xff] %vm2291_vm0, %v2290_v19 }
 0x37d   :  { %2297 = vsyncpa [#allocation3], 1 }
 0x37e   :  { %2298 = vsyncpa [#allocation5], 1 }

</bundles_post_ra>
